<compile_context>
chip_gen: v5e
topology: v5e:2x2
jax: 0.10.0
libtpu: 0.0.40
codegen_flags: <defaults>
</compile_context>

<pallas_src>
import math

import jax
import jax.numpy as jnp
from jax.experimental import pallas as pl
from jax.experimental.pallas import tpu as pltpu


_LANE = 128       # vreg lane width
_SUBLANE = 8      # vreg sublane count (f32)
_TS_MAX = 2048    # lanes per block  (multiple of 128)  -> ~2 MiB f32 blocks
_TR_MAX = 256     # rows  per block  (multiple of 8)


def _round_up(x: int, m: int) -> int:
    return ((x + m - 1) // m) * m


def _denormalize_kernel(x_ref, std_ref, mean_ref, o_ref):
    # out[r, s] = x[r, s] * std[r] + mean[r]
    # x_ref/o_ref: (TR, TS) lane-dense tile; std_ref/mean_ref: (TR, 1) columns
    # broadcast across the 128-lane axis. Pure VPU, memory-bound.
    o_ref[...] = x_ref[...] * std_ref[...] + mean_ref[...]


def _per_channel(v, batch: int, channels: int, dtype) -> jax.Array:
    """Broadcast a float / (C,) / (1,C) / (B,C) mean-or-std to shape (B, C)."""
    v = jnp.asarray(v, dtype=dtype)
    if v.ndim == 0:
        return jnp.full((batch, channels), v, dtype=dtype)
    if v.ndim == 1:
        if v.shape[0] == 1:
            return jnp.full((batch, channels), v[0], dtype=dtype)
        return jnp.broadcast_to(v[None, :], (batch, channels))
    v = v.reshape(v.shape[0], -1)[:, :channels]
    return jnp.broadcast_to(v, (batch, channels))


def denormalize_pallas(data: jax.Array, mean, std) -> jax.Array:
    """JAX/Pallas equivalent of `denormalize(data, mean, std)`.

    `data` is [B, C, *spatial] (any number of trailing spatial dims, e.g.
    [B, C, H, W] or [B, C, D, H, W]); `mean` / `std` are floats or per-channel
    arrays. Returns an array of the same shape and dtype as `data`.
    """
    if data.ndim < 2:
        raise ValueError(f"`data.ndim` must be >= 2 (got {data.ndim}).")

    shape = data.shape
    B, C = int(shape[0]), int(shape[1])
    spatial = shape[2:]
    S = int(math.prod(spatial)) if spatial else 1
    R = B * C
    dtype = data.dtype

    # Per-(batch, channel) affine params in the data's dtype (no upcast).
    mean_rows = _per_channel(mean, B, C, dtype).reshape(R)
    std_rows = _per_channel(std, B, C, dtype).reshape(R)

    # Lane-dense flatten: spatial product on the 128-lane axis, NCHW kept.
    x2d = data.reshape(R, S)

    TS = min(_round_up(S, _LANE), _TS_MAX)
    TR = min(_round_up(R, _SUBLANE), _TR_MAX)
    S_pad = _round_up(S, TS)
    R_pad = _round_up(R, TR)

    if (R_pad, S_pad) != (R, S):
        x2d = jnp.pad(x2d, ((0, R_pad - R), (0, S_pad - S)))
    if R_pad != R:
        mean_rows = jnp.pad(mean_rows, (0, R_pad - R))
        std_rows = jnp.pad(std_rows, (0, R_pad - R))
    mean_col = mean_rows.reshape(R_pad, 1)
    std_col = std_rows.reshape(R_pad, 1)

    grid = (R_pad // TR, S_pad // TS)

    out = pl.pallas_call(
        _denormalize_kernel,
        out_shape=jax.ShapeDtypeStruct((R_pad, S_pad), dtype),
        grid=grid,
        in_specs=[
            pl.BlockSpec((TR, TS), lambda i, j: (i, j)),
            pl.BlockSpec((TR, 1), lambda i, j: (i, 0)),
            pl.BlockSpec((TR, 1), lambda i, j: (i, 0)),
        ],
        out_specs=pl.BlockSpec((TR, TS), lambda i, j: (i, j)),
        compiler_params=pltpu.CompilerParams(
            dimension_semantics=("parallel", "parallel")),
    )(x2d, std_col, mean_col)

    out = out[:R, :S]
    return out.reshape(shape)


class Denormalize:
    """Mirror of the PyTorch Denormalize module: out = image * std + mean."""

    def __init__(self, mean, std):
        self.mean = mean
        self.std = std

    def __repr__(self):
        return f"{self.__class__.__name__}(mean={self.mean}, std={self.std})"

    def __call__(self, image: jax.Array) -> jax.Array:
        return denormalize_pallas(image, self.mean, self.std)


if __name__ == "__main__":
    key = jax.random.PRNGKey(0)
    k1, k2 = jax.random.split(key)

    # 4D input [B=2, C=4, H=16, W=16] in the module's NCHW layout.
    x = jax.random.uniform(k1, (2, 4, 16, 16), dtype=jnp.float32)

    # Case 1: scalar mean/std (docstring example Denormalize(0.0, 255.)).
    out = jax.block_until_ready(Denormalize(0.0, 255.0)(x))
    ref = x * 255.0
    assert out.shape == x.shape, out.shape
    assert out.dtype == x.dtype, out.dtype
    assert bool(jnp.allclose(out, ref, rtol=1e-6, atol=1e-6)), "scalar mismatch"

    # Case 2: per-channel mean/std of shape (1, C).
    mean = jnp.array([[0.1, 0.2, 0.3, 0.4]], dtype=jnp.float32)
    std = jnp.array([[2.0, 3.0, 4.0, 5.0]], dtype=jnp.float32)
    out2 = jax.block_until_ready(Denormalize(mean, std)(x))
    ref2 = x * std.reshape(1, 4, 1, 1) + mean.reshape(1, 4, 1, 1)
    assert bool(jnp.allclose(out2, ref2, rtol=1e-6, atol=1e-6)), "per-channel mismatch"

    # Case 3: 5D input (docstring example), mean zeros(1,4), std 255*ones(1,4).
    x5 = jax.random.uniform(k2, (1, 4, 3, 3, 3), dtype=jnp.float32)
    out3 = jax.block_until_ready(
        Denormalize(jnp.zeros((1, 4), jnp.float32),
                    255.0 * jnp.ones((1, 4), jnp.float32))(x5))
    ref3 = x5 * 255.0
    assert out3.shape == x5.shape, out3.shape
    assert bool(jnp.allclose(out3, ref3, rtol=1e-6, atol=1e-6)), "5D mismatch"

    print("KERNEL_OK")
</pallas_src>

<mosaic_0001>
module attributes {stable_mosaic.version = 11 : i64} {
  func.func @_denormalize_kernel(%arg0: i32, %arg1: i32, %arg2: memref<8x256xf32, #tpu.memory_space<vmem>>, %arg3: memref<8x1xf32, #tpu.memory_space<vmem>>, %arg4: memref<8x1xf32, #tpu.memory_space<vmem>>, %arg5: memref<8x256xf32, #tpu.memory_space<vmem>>) attributes {dimension_semantics = [#tpu.dimension_semantics<parallel>, #tpu.dimension_semantics<parallel>], iteration_bounds = array<i64: 1, 1>, scalar_prefetch = 0 : i64, scratch_operands = 0 : i64, tpu.core_type = #tpu.core_type<tc>, window_params = [{transform_indices = @transform_0, window_bounds = array<i64: 8, 256>}, {transform_indices = @transform_1, window_bounds = array<i64: 8, 1>}, {transform_indices = @transform_2, window_bounds = array<i64: 8, 1>}, {transform_indices = @transform_3, window_bounds = array<i64: 8, 256>}]} {
    %c0 = arith.constant 0 : index
    %c0_0 = arith.constant 0 : index
    %0 = vector.load %arg2[%c0, %c0_0] : memref<8x256xf32, #tpu.memory_space<vmem>>, vector<8x256xf32>
    %c0_1 = arith.constant 0 : index
    %c0_2 = arith.constant 0 : index
    %1 = vector.load %arg3[%c0_1, %c0_2] : memref<8x1xf32, #tpu.memory_space<vmem>>, vector<8x1xf32>
    %2 = vector.broadcast %1 : vector<8x1xf32> to vector<8x256xf32>
    %3 = arith.mulf %0, %2 : vector<8x256xf32>
    %c0_3 = arith.constant 0 : index
    %c0_4 = arith.constant 0 : index
    %4 = vector.load %arg4[%c0_3, %c0_4] : memref<8x1xf32, #tpu.memory_space<vmem>>, vector<8x1xf32>
    %5 = vector.broadcast %4 : vector<8x1xf32> to vector<8x256xf32>
    %6 = arith.addf %3, %5 : vector<8x256xf32>
    %c0_5 = arith.constant 0 : index
    %c0_6 = arith.constant 0 : index
    %7 = vector.load %arg5[%c0_5, %c0_6] : memref<8x256xf32, #tpu.memory_space<vmem>>, vector<8x256xf32>
    tpu.vector_store %arg5[%c0_5, %c0_6], %6 {strides = array<i32>} : memref<8x256xf32, #tpu.memory_space<vmem>>, vector<8x256xf32>,
    return
  }
  func.func @transform_0(%arg0: i32, %arg1: i32) -> (i32, i32) {
    %c0_i32 = arith.constant 0 : i32
    return %arg0, %arg1 : i32, i32
  }
  func.func @transform_1(%arg0: i32, %arg1: i32) -> (i32, i32) {
    %c0_i32 = arith.constant 0 : i32
    %c0_i32_0 = arith.constant 0 : i32
    return %arg0, %c0_i32 : i32, i32
  }
  func.func @transform_2(%arg0: i32, %arg1: i32) -> (i32, i32) {
    %c0_i32 = arith.constant 0 : i32
    %c0_i32_0 = arith.constant 0 : i32
    return %arg0, %c0_i32 : i32, i32
  }
  func.func @transform_3(%arg0: i32, %arg1: i32) -> (i32, i32) {
    %c0_i32 = arith.constant 0 : i32
    return %arg0, %arg1 : i32, i32
  }
}

</mosaic_0001>

<bundles_post_ra>
// kernel: tpu_custom_call.1
= control target key start
LH: loop header
LB: loop body
LE: loop exit
PB: predicated region body
PF: predicated region fallthrough
CT: control target
= control target key end

     0   :  { %s117_s0 = inlined_call_operand.vmem [shape: f32[8,256], index: 0, kind: input, shape index: {}]   ;;  %s118_s1 = inlined_call_operand.vmem [shape: f32[8,1], index: 1, kind: input, shape index: {}]   ;;  %s119_s2 = inlined_call_operand.vmem [shape: f32[8,1], index: 2, kind: input, shape index: {}]   ;;  %s120_s3 = inlined_call_operand.hbm [shape: f32[8,256], index: 3, kind: output, shape index: {}]  }
   0x1   :  { %v17_v0 = vld [vmem:[%s118_s1] sm:$0xff] }
   0x2   :  { %8 = vsyncpa [#allocation3], 0  ;;  %v80_v1 = vmov 0   ;;  %v25_v2 = vld [vmem:[%s119_s2] sm:$0xff]  ;;  %v16_v5 = vld [vmem:[%s117_s0 + $0x8] sm:$0xff]  ;;  %s81_s1 = smov [#allocation2]  }
   0x3   :  { %53 = vset.pattern.permute.xlu0 %v80_v1  ;;  %v15_v4 = vld [vmem:[%s117_s0] sm:$0xff]  ;;  %s40_s20 = sshll.u32 %s81_s1, 4  ;;  %s42_s23 = sshll.u32 %s120_s3, 4  ;;  %s41_s20 = int_to_ptr.vmem [resolvable:$true] %s40_s20  ;;  %s43_s23 = int_to_ptr.hbm [resolvable:$true] %s42_s23 }
   0x4   :  { %20 = vperm.xlu0 %53, %v17_v0  }
   0xc   :  { %28 = vperm.xlu0 %53, %v25_v2  }
  0x76   :  { %v21_v3 = vpop.permute.xlu0 %20 }
  0x77   :  { %v23_v6 = vmul.f32 %v21_v3, %v15_v4  ;;  %v24_v7 = vmul.f32 %v21_v3, %v16_v5 }
  0x7e   :  { %v29_v8 = vpop.permute.xlu0 %28 }
  0x7f   :  { %v31_v9 = vadd.f32 %v29_v8, %v23_v6  ;;  %v32_v10 = vadd.f32 %v29_v8, %v24_v7 }
  0x81   :  { %33 = vst [vmem:[#allocation2] sm:$0xff] %v31_v9 }
  0x82   :  { %34 = vst [vmem:[#allocation2 + $0x8] sm:$0xff] %v32_v10 }
  0x83   :  { %45 = dma.vmem_to_hbm [thread:$0]  %s41_s20, 256, %s43_s23, [#allocation3]  }
  0x84   :  { %78 = dma.done.wait [#allocation3], 256  }
  0x85   :  { %79 = vsyncadd [#allocation3], 4294967040 }
  0x86   :  { %50 = vsyncpa [#allocation3], 1 }

</bundles_post_ra>
